<compile_context>
chip_gen: v7x
topology: tpu7x:2x2x1
jax: 0.10.0
libtpu: 0.0.40
codegen_flags: <defaults>
</compile_context>

<pallas_src>
import jax
import jax.numpy as jnp
from jax import lax
from jax.experimental import pallas as pl
from jax.experimental.pallas import tpu as pltpu

EPS = 1e-5


def _make_kernel(N, C_in, C_out, Lo, downsample, compute_dtype):
    R = N * Lo          # rows of every activation slab (MXU M dimension)
    inv_r = 1.0 / R

    def mm(a, b):
        return jnp.dot(a, b, preferred_element_type=jnp.float32)

    def bn_train(h, gamma, beta):
        # training-mode BatchNorm1d over all (batch, position) rows, folded to
        # one scale/shift pass; single sum & sum-of-squares reduction (f32).
        s = jnp.sum(h, axis=0, keepdims=True)
        ss = jnp.sum(h * h, axis=0, keepdims=True)
        mean = s * inv_r
        var = jnp.maximum(ss * inv_r - mean * mean, 0.0)
        scale = gamma * lax.rsqrt(var + EPS)
        shift = beta - mean * scale
        return h * scale + shift

    def masks():
        row = lax.broadcasted_iota(jnp.int32, (R, 1), 0)
        t = row % Lo
        return t == 0, t == Lo - 1           # first / last position per batch

    def shift_down(z, first):
        # result[n, t] = z[n, t-1], zero at t == 0 (also kills cross-batch wrap)
        return jnp.where(first, 0.0, pltpu.roll(z, shift=1, axis=0))

    def shift_up(z, last):
        # result[n, t] = z[n, t+1], zero at t == Lo-1
        return jnp.where(last, 0.0, pltpu.roll(z, shift=R - 1, axis=0))

    def conv_k3(lhs_cd, wcat_ref, b_ref, first, last):
        # k=3, s=1, p=1 conv as ONE wide-N matmul: z = lhs @ [w0 | w1 | w2];
        # the left/right tap outputs are row-shifted (XLU roll) and masked at
        # batch boundaries.  No padded scratch, no per-tap matmuls/recasts.
        z = mm(lhs_cd, wcat_ref[...])                        # (R, 3*C_out) f32
        return (shift_down(z[:, 0:C_out], first)
                + z[:, C_out:2 * C_out]
                + shift_up(z[:, 2 * C_out:3 * C_out], last)
                + b_ref[...])

    if downsample:
        def kernel(x4_ref, w14_ref, w0d_ref, wd_ref, b1_ref, w2c_ref, b2_ref,
                   g_ref, be_ref, bd_ref, gd_ref, bed_ref, out_ref):
            first, last = masks()
            x4 = x4_ref[...]                    # (R, 4*C_in), compute dtype
            ph3 = x4[:, 3 * C_in:4 * C_in]      # phase-3 lane group

            # conv1 (k=5, s=4, p=1): taps 1..4 are exactly the 4 phase lane
            # groups of x4 -> ONE matmul with contracting dim 4*C_in.
            c1 = mm(x4, w14_ref[...])                        # (R, C_out) f32
            # tap 0 (phase 3 of the previous output position) and the residual
            # 1x1 conv share the same LHS slab -> one matmul, N = 2*C_out.
            y = mm(ph3, w0d_ref[...])                        # (R, 2*C_out) f32
            c1 = c1 + shift_down(y[:, 0:C_out], first) + b1_ref[...]

            h1 = jnp.maximum(bn_train(c1, g_ref[...], be_ref[...]), 0.0)

            # conv2 (k=3, s=1, p=1), shared bn again (fresh batch stats)
            c2 = conv_k3(h1.astype(compute_dtype), w2c_ref, b2_ref, first, last)
            h2 = bn_train(c2, g_ref[...], be_ref[...])

            # residual: Conv1d(1x1) -> MaxPool1d(4) -> BN.  Pool window t is
            # exactly the 4 phase lane groups of x4 row t; the per-channel
            # bias commutes with the max.
            r = y[:, C_out:2 * C_out]                        # phase-3 @ wd (reused)
            for ph in range(3):
                r = jnp.maximum(
                    r, mm(x4[:, ph * C_in:(ph + 1) * C_in], wd_ref[...]))
            res = bn_train(r + bd_ref[...], gd_ref[...], bed_ref[...])

            out_ref[...] = jnp.maximum(h2 + res, 0.0)
        return kernel

    def kernel_id(x_ref, w1c_ref, b1_ref, w2c_ref, b2_ref, g_ref, be_ref,
                  out_ref):
        first, last = masks()
        x = x_ref[...]                          # (R, C) f32 (identity residual)
        xc = x.astype(compute_dtype)            # single cast for the MXU

        c1 = conv_k3(xc, w1c_ref, b1_ref, first, last)       # conv1 k=3 s=1 p=1
        h1 = jnp.maximum(bn_train(c1, g_ref[...], be_ref[...]), 0.0)
        c2 = conv_k3(h1.astype(compute_dtype), w2c_ref, b2_ref, first, last)
        h2 = bn_train(c2, g_ref[...], be_ref[...])

        out_ref[...] = jnp.maximum(h2 + x, 0.0)              # identity residual
    return kernel_id


def init_params(key, in_c, out_c):
    """Deterministic synthetic parameters with the module's shapes."""
    ks = jax.random.split(key, 8)
    K1 = 3 if in_c == out_c else 5
    p = {
        "w1": 0.2 * jax.random.normal(ks[0], (out_c, in_c, K1), jnp.float32),
        "b1": 0.1 * jax.random.normal(ks[1], (out_c,), jnp.float32),
        "w2": 0.2 * jax.random.normal(ks[2], (out_c, out_c, 3), jnp.float32),
        "b2": 0.1 * jax.random.normal(ks[3], (out_c,), jnp.float32),
        "bn_g": 1.0 + 0.1 * jax.random.normal(ks[4], (out_c,), jnp.float32),
        "bn_b": 0.1 * jax.random.normal(ks[5], (out_c,), jnp.float32),
    }
    if in_c != out_c:
        p["wd"] = 0.2 * jax.random.normal(ks[6], (out_c, in_c, 1), jnp.float32)
        p["bd"] = 0.1 * jax.random.normal(ks[7], (out_c,), jnp.float32)
        p["bnd_g"] = jnp.full((out_c,), 0.9, jnp.float32)
        p["bnd_b"] = jnp.full((out_c,), 0.05, jnp.float32)
    return p


def basic_block_max_pallas(x_ncl, params, in_c, out_c,
                           compute_dtype=jnp.bfloat16):
    """x_ncl: (N, C_in, L) float32 (PyTorch NCL). Returns (N, C_out, L_out).

    compute_dtype controls the matmul operand precision (bf16 recommended on
    v5e/v6e/v7x; BN / ReLU / residual math is always f32).
    """
    N, C, L = x_ncl.shape
    assert C == in_c
    downsample = in_c != out_c
    if downsample:
        assert L % 4 == 0, "stride-4 block requires L divisible by 4"
        Lo = L // 4          # conv1 (k=5,s=4,p=1) and MaxPool1d(4) lengths agree
    else:
        Lo = L
    R = N * Lo
    cd = compute_dtype

    x_nlc = jnp.transpose(x_ncl, (0, 2, 1)).astype(jnp.float32)   # (N, L, C_in)

    # ---- wrapper-side weight packing (free; torch conv weight is (O, I, K)) ----
    w2c = params["w2"].transpose(1, 2, 0).reshape(out_c, 3 * out_c).astype(cd)
    b1 = params["b1"].reshape(1, out_c).astype(jnp.float32)
    b2 = params["b2"].reshape(1, out_c).astype(jnp.float32)
    g = params["bn_g"].reshape(1, out_c).astype(jnp.float32)
    be = params["bn_b"].reshape(1, out_c).astype(jnp.float32)

    if downsample:
        # Phase-major activation slab: x4[n*Lo+t, ph*C_in:(ph+1)*C_in] =
        # x[n, 4t+ph, :].  This is a FREE reshape of NLC (no pad / transpose),
        # cast once here (x is only ever a matmul LHS on this path).
        x4 = x_nlc.reshape(R, 4 * in_c).astype(cd)
        w1 = params["w1"]                                         # (O, I, 5)
        w14 = w1[:, :, 1:5].transpose(2, 1, 0).reshape(4 * in_c, out_c).astype(cd)
        w1_0 = w1[:, :, 0].T                                      # (C_in, C_out)
        wd_f = params["wd"][:, :, 0].T                            # (C_in, C_out)
        w0d = jnp.concatenate([w1_0, wd_f], axis=1).astype(cd)    # (C_in, 2*C_out)
        wd = wd_f.astype(cd)
        bd = params["bd"].reshape(1, out_c).astype(jnp.float32)
        gd = params["bnd_g"].reshape(1, out_c).astype(jnp.float32)
        bed = params["bnd_b"].reshape(1, out_c).astype(jnp.float32)
        args = [x4, w14, w0d, wd, b1, w2c, b2, g, be, bd, gd, bed]
        flops = 2 * R * out_c * (9 * in_c + 3 * out_c)
    else:
        x2 = x_nlc.reshape(R, in_c)          # f32: identity residual add needs it
        w1c = params["w1"].transpose(1, 2, 0).reshape(in_c, 3 * out_c).astype(cd)
        args = [x2, w1c, b1, w2c, b2, g, be]
        flops = 2 * R * 3 * out_c * (in_c + out_c)

    # Rough VMEM budget for the fully fused single-block kernel (inputs +
    # output + live f32 intermediates); larger problems need the tiled
    # two-pass-BN variant (see TODO at top of file).
    in_bytes = sum(int(a.size) * a.dtype.itemsize for a in args)
    out_bytes = R * out_c * 4
    live_bytes = 10 * R * max(3 * out_c, 4 * in_c) * 4
    assert in_bytes + out_bytes + live_bytes < 24 * 1024 * 1024, (
        "problem too large for the single-block fused kernel; needs the tiled "
        "two-pass BN variant")

    kernel = _make_kernel(N, in_c, out_c, Lo, downsample, cd)
    vmem = pl.BlockSpec(memory_space=pltpu.MemorySpace.VMEM)
    out2d = pl.pallas_call(
        kernel,
        out_shape=jax.ShapeDtypeStruct((R, out_c), jnp.float32),
        in_specs=[vmem] * len(args),
        out_specs=vmem,
        compiler_params=pltpu.CompilerParams(
            vmem_limit_bytes=32 * 1024 * 1024),
        cost_estimate=pl.CostEstimate(
            flops=int(flops),
            transcendentals=int(3 * out_c),
            bytes_accessed=int(in_bytes + out_bytes)),
    )(*args)
    return out2d.reshape(N, Lo, out_c).transpose(0, 2, 1)   # back to PyTorch NCL


# ----------------------- pure-JAX reference (NCL, mirrors PyTorch) -----------
def _bn_train_ref(h, g, b):
    mean = h.mean(axis=(0, 2), keepdims=True)
    var = ((h - mean) ** 2).mean(axis=(0, 2), keepdims=True)
    return (h - mean) * lax.rsqrt(var + EPS) * g[None, :, None] + b[None, :, None]


def basic_block_max_reference(x, params, in_c, out_c):
    downsample = in_c != out_c
    s1, p1 = (4, 1) if downsample else (1, 1)
    dn = ("NCH", "OIH", "NCH")
    h = lax.conv_general_dilated(x, params["w1"], (s1,), [(p1, p1)],
                                 dimension_numbers=dn) + params["b1"][None, :, None]
    h = jax.nn.relu(_bn_train_ref(h, params["bn_g"], params["bn_b"]))
    h = lax.conv_general_dilated(h, params["w2"], (1,), [(1, 1)],
                                 dimension_numbers=dn) + params["b2"][None, :, None]
    h = _bn_train_ref(h, params["bn_g"], params["bn_b"])
    if downsample:
        r = lax.conv_general_dilated(x, params["wd"], (1,), [(0, 0)],
                                     dimension_numbers=dn) + params["bd"][None, :, None]
        Nb, Cb, Lb = r.shape
        r = r.reshape(Nb, Cb, Lb // 4, 4).max(axis=-1)      # MaxPool1d(4)
        r = _bn_train_ref(r, params["bnd_g"], params["bnd_b"])
    else:
        r = x
    return jax.nn.relu(h + r)


if __name__ == "__main__":
    key = jax.random.PRNGKey(0)
    kx, kp1, kp2 = jax.random.split(key, 3)

    x = jax.random.normal(kx, (2, 4, 16), jnp.float32)   # (N, C_in, L), NCL

    # Case 1: in_channel != out_channel -> strided conv1 + conv1x1/MaxPool/BN
    params = init_params(kp1, 4, 8)
    ref = basic_block_max_reference(x, params, 4, 8)

    out = basic_block_max_pallas(x, params, 4, 8, compute_dtype=jnp.float32)
    jax.block_until_ready(out)
    assert out.shape == (2, 8, 4), out.shape
    assert jnp.allclose(out, ref, atol=1e-3, rtol=1e-3), float(jnp.abs(out - ref).max())

    # bf16-matmul path (default, recommended on v5e/v6e/v7x). Loose tolerance:
    # bf16 rounding amplified by training-mode BN over only N*Lo=8 rows; the
    # f32 path above is the tight correctness check.
    out_bf = basic_block_max_pallas(x, params, 4, 8)
    jax.block_until_ready(out_bf)
    assert jnp.allclose(out_bf, ref, atol=1e-1, rtol=1e-1), float(jnp.abs(out_bf - ref).max())

    # Case 2: in_channel == out_channel -> k=3 conv1, identity residual
    params2 = init_params(kp2, 4, 4)
    ref2 = basic_block_max_reference(x, params2, 4, 4)

    out2 = basic_block_max_pallas(x, params2, 4, 4, compute_dtype=jnp.float32)
    jax.block_until_ready(out2)
    assert out2.shape == (2, 4, 16), out2.shape
    assert jnp.allclose(out2, ref2, atol=1e-3, rtol=1e-3), float(jnp.abs(out2 - ref2).max())

    out2_bf = basic_block_max_pallas(x, params2, 4, 4)
    jax.block_until_ready(out2_bf)
    assert jnp.allclose(out2_bf, ref2, atol=1e-1, rtol=1e-1), float(jnp.abs(out2_bf - ref2).max())

    print("KERNEL_OK")
</pallas_src>

<mosaic_0001>
module attributes {stable_mosaic.version = 11 : i64} {
  func.func @kernel(%arg0: memref<8x16xf32, #tpu.memory_space<vmem>>, %arg1: memref<16x8xf32, #tpu.memory_space<vmem>>, %arg2: memref<4x16xf32, #tpu.memory_space<vmem>>, %arg3: memref<4x8xf32, #tpu.memory_space<vmem>>, %arg4: memref<1x8xf32, #tpu.memory_space<vmem>>, %arg5: memref<8x24xf32, #tpu.memory_space<vmem>>, %arg6: memref<1x8xf32, #tpu.memory_space<vmem>>, %arg7: memref<1x8xf32, #tpu.memory_space<vmem>>, %arg8: memref<1x8xf32, #tpu.memory_space<vmem>>, %arg9: memref<1x8xf32, #tpu.memory_space<vmem>>, %arg10: memref<1x8xf32, #tpu.memory_space<vmem>>, %arg11: memref<1x8xf32, #tpu.memory_space<vmem>>, %arg12: memref<8x8xf32, #tpu.memory_space<vmem>>) attributes {dimension_semantics = [], scalar_prefetch = 0 : i64, scratch_operands = 0 : i64, tpu.core_type = #tpu.core_type<tc>} {
    %0 = tpu.iota {dimensions = array<i32: 0>} : vector<8x1xi32>
    %c4_i32 = arith.constant 4 : i32
    %c0_i32 = arith.constant 0 : i32
    %1 = arith.cmpi eq, %c4_i32, %c0_i32 : i32
    %c1_i32 = arith.constant 1 : i32
    %2 = arith.select %1, %c1_i32, %c4_i32 : i32
    %3 = vector.broadcast %2 : i32 to vector<8x1xi32>
    %4 = arith.remsi %0, %3 : vector<8x1xi32>
    %c0_i32_0 = arith.constant 0 : i32
    %5 = vector.broadcast %c0_i32_0 : i32 to vector<8x1xi32>
    %6 = arith.cmpi ne, %4, %5 : vector<8x1xi32>
    %c0_i32_1 = arith.constant 0 : i32
    %7 = vector.broadcast %c0_i32_1 : i32 to vector<8x1xi32>
    %8 = arith.cmpi slt, %4, %7 : vector<8x1xi32>
    %c0_i32_2 = arith.constant 0 : i32
    %9 = arith.cmpi slt, %2, %c0_i32_2 : i32
    %10 = vector.broadcast %9 : i1 to vector<8x1xi1>
    %11 = vector.broadcast %10 : vector<8x1xi1> to vector<8x1xi1>
    %12 = arith.xori %8, %11 : vector<8x1xi1>
    %13 = arith.andi %12, %6 : vector<8x1xi1>
    %14 = vector.broadcast %2 : i32 to vector<8x1xi32>
    %15 = arith.addi %4, %14 : vector<8x1xi32>
    %16 = arith.select %13, %15, %4 : vector<8x1xi1>, vector<8x1xi32>
    %c0_i32_3 = arith.constant 0 : i32
    %17 = vector.broadcast %c0_i32_3 : i32 to vector<8x1xi32>
    %18 = arith.cmpi eq, %16, %17 : vector<8x1xi32>
    %c3_i32 = arith.constant 3 : i32
    %19 = vector.broadcast %c3_i32 : i32 to vector<8x1xi32>
    %20 = arith.cmpi eq, %16, %19 : vector<8x1xi32>
    %c0 = arith.constant 0 : index
    %c0_4 = arith.constant 0 : index
    %21 = vector.load %arg0[%c0, %c0_4] : memref<8x16xf32, #tpu.memory_space<vmem>>, vector<8x16xf32>
    %22 = vector.extract_strided_slice %21 {offsets = [0, 12], sizes = [8, 4], strides = [1, 1]} : vector<8x16xf32> to vector<8x4xf32>
    %c0_5 = arith.constant 0 : index
    %c0_6 = arith.constant 0 : index
    %23 = vector.load %arg1[%c0_5, %c0_6] : memref<16x8xf32, #tpu.memory_space<vmem>>, vector<16x8xf32>
    %cst = arith.constant dense<0.000000e+00> : vector<8x8xf32>
    %24 = tpu.matmul %21, %23, %cst {dimension_numbers = #tpu.dot_dimension_numbers<[1], [0], [0], [1], [0, 0, 1, 1], [], []>} : vector<8x16xf32>, vector<16x8xf32>, vector<8x8xf32> -> vector<8x8xf32>
    %c0_7 = arith.constant 0 : index
    %c0_8 = arith.constant 0 : index
    %25 = vector.load %arg2[%c0_7, %c0_8] : memref<4x16xf32, #tpu.memory_space<vmem>>, vector<4x16xf32>
    %cst_9 = arith.constant dense<0.000000e+00> : vector<8x16xf32>
    %26 = tpu.matmul %22, %25, %cst_9 {dimension_numbers = #tpu.dot_dimension_numbers<[1], [0], [0], [1], [0, 0, 1, 1], [], []>} : vector<8x4xf32>, vector<4x16xf32>, vector<8x16xf32> -> vector<8x16xf32>
    %27 = vector.extract_strided_slice %26 {offsets = [0, 0], sizes = [8, 8], strides = [1, 1]} : vector<8x16xf32> to vector<8x8xf32>
    %c1_i32_10 = arith.constant 1 : i32
    %28 = tpu.dynamic_rotate %27 by %c1_i32_10 dim 0 : vector<8x8xf32>, i32 -> vector<8x8xf32>
    %cst_11 = arith.constant 0.000000e+00 : f32
    %29 = vector.shape_cast %18 : vector<8x1xi1> to vector<8x1xi1>
    %30 = vector.broadcast %29 : vector<8x1xi1> to vector<8x8xi1>
    %31 = vector.broadcast %cst_11 : f32 to vector<8x8xf32>
    %32 = arith.select %30, %31, %28 : vector<8x8xi1>, vector<8x8xf32>
    %33 = arith.addf %24, %32 : vector<8x8xf32>
    %c0_12 = arith.constant 0 : index
    %c0_13 = arith.constant 0 : index
    %34 = vector.load %arg4[%c0_12, %c0_13] : memref<1x8xf32, #tpu.memory_space<vmem>>, vector<1x8xf32>
    %35 = vector.broadcast %34 : vector<1x8xf32> to vector<8x8xf32>
    %36 = arith.addf %33, %35 : vector<8x8xf32>
    %c0_14 = arith.constant 0 : index
    %c0_15 = arith.constant 0 : index
    %37 = vector.load %arg7[%c0_14, %c0_15] : memref<1x8xf32, #tpu.memory_space<vmem>>, vector<1x8xf32>
    %c0_16 = arith.constant 0 : index
    %c0_17 = arith.constant 0 : index
    %38 = vector.load %arg8[%c0_16, %c0_17] : memref<1x8xf32, #tpu.memory_space<vmem>>, vector<1x8xf32>
    %cst_18 = arith.constant dense<0.000000e+00> : vector<8xf32>
    %39 = vector.multi_reduction <add>, %36, %cst_18 [0] : vector<8x8xf32> to vector<8xf32>
    %40 = vector.shape_cast %39 : vector<8xf32> to vector<1x8xf32>
    %41 = arith.mulf %36, %36 : vector<8x8xf32>
    %cst_19 = arith.constant dense<0.000000e+00> : vector<8xf32>
    %42 = vector.multi_reduction <add>, %41, %cst_19 [0] : vector<8x8xf32> to vector<8xf32>
    %43 = vector.shape_cast %42 : vector<8xf32> to vector<1x8xf32>
    %cst_20 = arith.constant 1.250000e-01 : f32
    %44 = vector.broadcast %cst_20 : f32 to vector<1x8xf32>
    %45 = arith.mulf %40, %44 : vector<1x8xf32>
    %cst_21 = arith.constant 1.250000e-01 : f32
    %46 = vector.broadcast %cst_21 : f32 to vector<1x8xf32>
    %47 = arith.mulf %43, %46 : vector<1x8xf32>
    %48 = arith.mulf %45, %45 : vector<1x8xf32>
    %49 = arith.subf %47, %48 : vector<1x8xf32>
    %cst_22 = arith.constant 0.000000e+00 : f32
    %50 = vector.broadcast %cst_22 : f32 to vector<1x8xf32>
    %51 = arith.maximumf %49, %50 : vector<1x8xf32>
    %cst_23 = arith.constant 9.99999974E-6 : f32
    %52 = vector.broadcast %cst_23 : f32 to vector<1x8xf32>
    %53 = arith.addf %51, %52 : vector<1x8xf32>
    %54 = math.rsqrt %53 : vector<1x8xf32>
    %55 = arith.mulf %37, %54 : vector<1x8xf32>
    %56 = arith.mulf %45, %55 : vector<1x8xf32>
    %57 = arith.subf %38, %56 : vector<1x8xf32>
    %58 = vector.broadcast %55 : vector<1x8xf32> to vector<8x8xf32>
    %59 = arith.mulf %36, %58 : vector<8x8xf32>
    %60 = vector.broadcast %57 : vector<1x8xf32> to vector<8x8xf32>
    %61 = arith.addf %59, %60 : vector<8x8xf32>
    %cst_24 = arith.constant 0.000000e+00 : f32
    %62 = vector.broadcast %cst_24 : f32 to vector<8x8xf32>
    %63 = arith.maximumf %61, %62 : vector<8x8xf32>
    %c0_25 = arith.constant 0 : index
    %c0_26 = arith.constant 0 : index
    %64 = vector.load %arg5[%c0_25, %c0_26] : memref<8x24xf32, #tpu.memory_space<vmem>>, vector<8x24xf32>
    %cst_27 = arith.constant dense<0.000000e+00> : vector<8x24xf32>
    %65 = tpu.matmul %63, %64, %cst_27 {dimension_numbers = #tpu.dot_dimension_numbers<[1], [0], [0], [1], [0, 0, 1, 1], [], []>} : vector<8x8xf32>, vector<8x24xf32>, vector<8x24xf32> -> vector<8x24xf32>
    %66 = vector.extract_strided_slice %65 {offsets = [0, 0], sizes = [8, 8], strides = [1, 1]} : vector<8x24xf32> to vector<8x8xf32>
    %c1_i32_28 = arith.constant 1 : i32
    %67 = tpu.dynamic_rotate %66 by %c1_i32_28 dim 0 : vector<8x8xf32>, i32 -> vector<8x8xf32>
    %cst_29 = arith.constant 0.000000e+00 : f32
    %68 = vector.shape_cast %18 : vector<8x1xi1> to vector<8x1xi1>
    %69 = vector.broadcast %68 : vector<8x1xi1> to vector<8x8xi1>
    %70 = vector.broadcast %cst_29 : f32 to vector<8x8xf32>
    %71 = arith.select %69, %70, %67 : vector<8x8xi1>, vector<8x8xf32>
    %72 = vector.extract_strided_slice %65 {offsets = [0, 8], sizes = [8, 8], strides = [1, 1]} : vector<8x24xf32> to vector<8x8xf32>
    %73 = arith.addf %71, %72 : vector<8x8xf32>
    %74 = vector.extract_strided_slice %65 {offsets = [0, 16], sizes = [8, 8], strides = [1, 1]} : vector<8x24xf32> to vector<8x8xf32>
    %c7_i32 = arith.constant 7 : i32
    %75 = tpu.dynamic_rotate %74 by %c7_i32 dim 0 : vector<8x8xf32>, i32 -> vector<8x8xf32>
    %cst_30 = arith.constant 0.000000e+00 : f32
    %76 = vector.shape_cast %20 : vector<8x1xi1> to vector<8x1xi1>
    %77 = vector.broadcast %76 : vector<8x1xi1> to vector<8x8xi1>
    %78 = vector.broadcast %cst_30 : f32 to vector<8x8xf32>
    %79 = arith.select %77, %78, %75 : vector<8x8xi1>, vector<8x8xf32>
    %80 = arith.addf %73, %79 : vector<8x8xf32>
    %c0_31 = arith.constant 0 : index
    %c0_32 = arith.constant 0 : index
    %81 = vector.load %arg6[%c0_31, %c0_32] : memref<1x8xf32, #tpu.memory_space<vmem>>, vector<1x8xf32>
    %82 = vector.broadcast %81 : vector<1x8xf32> to vector<8x8xf32>
    %83 = arith.addf %80, %82 : vector<8x8xf32>
    %c0_33 = arith.constant 0 : index
    %c0_34 = arith.constant 0 : index
    %84 = vector.load %arg7[%c0_33, %c0_34] : memref<1x8xf32, #tpu.memory_space<vmem>>, vector<1x8xf32>
    %c0_35 = arith.constant 0 : index
    %c0_36 = arith.constant 0 : index
    %85 = vector.load %arg8[%c0_35, %c0_36] : memref<1x8xf32, #tpu.memory_space<vmem>>, vector<1x8xf32>
    %cst_37 = arith.constant dense<0.000000e+00> : vector<8xf32>
    %86 = vector.multi_reduction <add>, %83, %cst_37 [0] : vector<8x8xf32> to vector<8xf32>
    %87 = vector.shape_cast %86 : vector<8xf32> to vector<1x8xf32>
    %88 = arith.mulf %83, %83 : vector<8x8xf32>
    %cst_38 = arith.constant dense<0.000000e+00> : vector<8xf32>
    %89 = vector.multi_reduction <add>, %88, %cst_38 [0] : vector<8x8xf32> to vector<8xf32>
    %90 = vector.shape_cast %89 : vector<8xf32> to vector<1x8xf32>
    %cst_39 = arith.constant 1.250000e-01 : f32
    %91 = vector.broadcast %cst_39 : f32 to vector<1x8xf32>
    %92 = arith.mulf %87, %91 : vector<1x8xf32>
    %cst_40 = arith.constant 1.250000e-01 : f32
    %93 = vector.broadcast %cst_40 : f32 to vector<1x8xf32>
    %94 = arith.mulf %90, %93 : vector<1x8xf32>
    %95 = arith.mulf %92, %92 : vector<1x8xf32>
    %96 = arith.subf %94, %95 : vector<1x8xf32>
    %cst_41 = arith.constant 0.000000e+00 : f32
    %97 = vector.broadcast %cst_41 : f32 to vector<1x8xf32>
    %98 = arith.maximumf %96, %97 : vector<1x8xf32>
    %cst_42 = arith.constant 9.99999974E-6 : f32
    %99 = vector.broadcast %cst_42 : f32 to vector<1x8xf32>
    %100 = arith.addf %98, %99 : vector<1x8xf32>
    %101 = math.rsqrt %100 : vector<1x8xf32>
    %102 = arith.mulf %84, %101 : vector<1x8xf32>
    %103 = arith.mulf %92, %102 : vector<1x8xf32>
    %104 = arith.subf %85, %103 : vector<1x8xf32>
    %105 = vector.broadcast %102 : vector<1x8xf32> to vector<8x8xf32>
    %106 = arith.mulf %83, %105 : vector<8x8xf32>
    %107 = vector.broadcast %104 : vector<1x8xf32> to vector<8x8xf32>
    %108 = arith.addf %106, %107 : vector<8x8xf32>
    %109 = vector.extract_strided_slice %26 {offsets = [0, 8], sizes = [8, 8], strides = [1, 1]} : vector<8x16xf32> to vector<8x8xf32>
    %110 = vector.extract_strided_slice %21 {offsets = [0, 0], sizes = [8, 4], strides = [1, 1]} : vector<8x16xf32> to vector<8x4xf32>
    %c0_43 = arith.constant 0 : index
    %c0_44 = arith.constant 0 : index
    %111 = vector.load %arg3[%c0_43, %c0_44] : memref<4x8xf32, #tpu.memory_space<vmem>>, vector<4x8xf32>
    %cst_45 = arith.constant dense<0.000000e+00> : vector<8x8xf32>
    %112 = tpu.matmul %110, %111, %cst_45 {dimension_numbers = #tpu.dot_dimension_numbers<[1], [0], [0], [1], [0, 0, 1, 1], [], []>} : vector<8x4xf32>, vector<4x8xf32>, vector<8x8xf32> -> vector<8x8xf32>
    %113 = arith.maximumf %109, %112 : vector<8x8xf32>
    %114 = vector.extract_strided_slice %21 {offsets = [0, 4], sizes = [8, 4], strides = [1, 1]} : vector<8x16xf32> to vector<8x4xf32>
    %c0_46 = arith.constant 0 : index
    %c0_47 = arith.constant 0 : index
    %115 = vector.load %arg3[%c0_46, %c0_47] : memref<4x8xf32, #tpu.memory_space<vmem>>, vector<4x8xf32>
    %cst_48 = arith.constant dense<0.000000e+00> : vector<8x8xf32>
    %116 = tpu.matmul %114, %115, %cst_48 {dimension_numbers = #tpu.dot_dimension_numbers<[1], [0], [0], [1], [0, 0, 1, 1], [], []>} : vector<8x4xf32>, vector<4x8xf32>, vector<8x8xf32> -> vector<8x8xf32>
    %117 = arith.maximumf %113, %116 : vector<8x8xf32>
    %118 = vector.extract_strided_slice %21 {offsets = [0, 8], sizes = [8, 4], strides = [1, 1]} : vector<8x16xf32> to vector<8x4xf32>
    %c0_49 = arith.constant 0 : index
    %c0_50 = arith.constant 0 : index
    %119 = vector.load %arg3[%c0_49, %c0_50] : memref<4x8xf32, #tpu.memory_space<vmem>>, vector<4x8xf32>
    %cst_51 = arith.constant dense<0.000000e+00> : vector<8x8xf32>
    %120 = tpu.matmul %118, %119, %cst_51 {dimension_numbers = #tpu.dot_dimension_numbers<[1], [0], [0], [1], [0, 0, 1, 1], [], []>} : vector<8x4xf32>, vector<4x8xf32>, vector<8x8xf32> -> vector<8x8xf32>
    %121 = arith.maximumf %117, %120 : vector<8x8xf32>
    %c0_52 = arith.constant 0 : index
    %c0_53 = arith.constant 0 : index
    %122 = vector.load %arg9[%c0_52, %c0_53] : memref<1x8xf32, #tpu.memory_space<vmem>>, vector<1x8xf32>
    %123 = vector.broadcast %122 : vector<1x8xf32> to vector<8x8xf32>
    %124 = arith.addf %121, %123 : vector<8x8xf32>
    %c0_54 = arith.constant 0 : index
    %c0_55 = arith.constant 0 : index
    %125 = vector.load %arg10[%c0_54, %c0_55] : memref<1x8xf32, #tpu.memory_space<vmem>>, vector<1x8xf32>
    %c0_56 = arith.constant 0 : index
    %c0_57 = arith.constant 0 : index
    %126 = vector.load %arg11[%c0_56, %c0_57] : memref<1x8xf32, #tpu.memory_space<vmem>>, vector<1x8xf32>
    %cst_58 = arith.constant dense<0.000000e+00> : vector<8xf32>
    %127 = vector.multi_reduction <add>, %124, %cst_58 [0] : vector<8x8xf32> to vector<8xf32>
    %128 = vector.shape_cast %127 : vector<8xf32> to vector<1x8xf32>
    %129 = arith.mulf %124, %124 : vector<8x8xf32>
    %cst_59 = arith.constant dense<0.000000e+00> : vector<8xf32>
    %130 = vector.multi_reduction <add>, %129, %cst_59 [0] : vector<8x8xf32> to vector<8xf32>
    %131 = vector.shape_cast %130 : vector<8xf32> to vector<1x8xf32>
    %cst_60 = arith.constant 1.250000e-01 : f32
    %132 = vector.broadcast %cst_60 : f32 to vector<1x8xf32>
    %133 = arith.mulf %128, %132 : vector<1x8xf32>
    %cst_61 = arith.constant 1.250000e-01 : f32
    %134 = vector.broadcast %cst_61 : f32 to vector<1x8xf32>
    %135 = arith.mulf %131, %134 : vector<1x8xf32>
    %136 = arith.mulf %133, %133 : vector<1x8xf32>
    %137 = arith.subf %135, %136 : vector<1x8xf32>
    %cst_62 = arith.constant 0.000000e+00 : f32
    %138 = vector.broadcast %cst_62 : f32 to vector<1x8xf32>
    %139 = arith.maximumf %137, %138 : vector<1x8xf32>
    %cst_63 = arith.constant 9.99999974E-6 : f32
    %140 = vector.broadcast %cst_63 : f32 to vector<1x8xf32>
    %141 = arith.addf %139, %140 : vector<1x8xf32>
    %142 = math.rsqrt %141 : vector<1x8xf32>
    %143 = arith.mulf %125, %142 : vector<1x8xf32>
    %144 = arith.mulf %133, %143 : vector<1x8xf32>
    %145 = arith.subf %126, %144 : vector<1x8xf32>
    %146 = vector.broadcast %143 : vector<1x8xf32> to vector<8x8xf32>
    %147 = arith.mulf %124, %146 : vector<8x8xf32>
    %148 = vector.broadcast %145 : vector<1x8xf32> to vector<8x8xf32>
    %149 = arith.addf %147, %148 : vector<8x8xf32>
    %150 = arith.addf %108, %149 : vector<8x8xf32>
    %cst_64 = arith.constant 0.000000e+00 : f32
    %151 = vector.broadcast %cst_64 : f32 to vector<8x8xf32>
    %152 = arith.maximumf %150, %151 : vector<8x8xf32>
    %c0_65 = arith.constant 0 : index
    %c0_66 = arith.constant 0 : index
    %153 = vector.load %arg12[%c0_65, %c0_66] : memref<8x8xf32, #tpu.memory_space<vmem>>, vector<8x8xf32>
    tpu.vector_store %arg12[%c0_65, %c0_66], %152 {strides = array<i32>} : memref<8x8xf32, #tpu.memory_space<vmem>>, vector<8x8xf32>,
    return
  }
}

</mosaic_0001>

<bundles_post_ra>
// kernel: tpu_custom_call.1
= control target key start
LH: loop header
LB: loop body
LE: loop exit
PB: predicated region body
PF: predicated region fallthrough
CT: control target
= control target key end

     0   :  { %s859_s27 = smov 116   ;;  %v860_v3 = vmov 0.0|0.0   ;;  %vm861_vm0 = vmmov 0   ;;  %v862_v5 = vmov 0.0   ;;  %vm68_vm1 = vcmask 1043456   ;;  %s1070_s0 = inlined_call_operand.vmem [shape: f32[8,16], index: 0, kind: input, shape index: {}]   ;;  %s1071_s1 = inlined_call_operand.vmem [shape: f32[16,8], index: 1, kind: input, shape index: {}]   ;;  %s1072_s2 = inlined_call_operand.vmem [shape: f32[4,16], index: 2, kind: input, shape index: {}]   ;;  %s1073_s3 = inlined_call_operand.vmem [shape: f32[4,8], index: 3, kind: input, shape index: {}]   ;;  %s1074_s4 = inlined_call_operand.vmem [shape: f32[1,8], index: 4, kind: input, shape index: {}]   ;;  %s1075_s5 = inlined_call_operand.vmem [shape: f32[8,24], index: 5, kind: input, shape index: {}]   ;;  %s1076_s6 = inlined_call_operand.vmem [shape: f32[1,8], index: 6, kind: input, shape index: {}]   ;;  %s1077_s7 = inlined_call_operand.vmem [shape: f32[1,8], index: 7, kind: input, shape index: {}]   ;;  %s1078_s8 = inlined_call_operand.vmem [shape: f32[1,8], index: 8, kind: input, shape index: {}]   ;;  %s1079_s9 = inlined_call_operand.vmem [shape: f32[1,8], index: 9, kind: input, shape index: {}]   ;;  %s1080_s10 = inlined_call_operand.vmem [shape: f32[1,8], index: 10, kind: input, shape index: {}]   ;;  %s1081_s11 = inlined_call_operand.vmem [shape: f32[1,8], index: 11, kind: input, shape index: {}]   ;;  %s1082_s12 = inlined_call_operand.hbm [shape: f32[8,8], index: 12, kind: output, shape index: {}]  }
   0x1   :  { %v58_v0 = vld [vmem:[%s1070_s0] sm:$0xff]  ;;  %v60_v2 = vld [vmem:[%s1071_s1 + $0x8] sm:$0xff]  ;;  %816 = vmatprep.subr.bf16.mxu1 %v860_v3  ;;  %793 = vmatprep.mubr.msk.f32.mxu1 %vm861_vm0, %v862_v5 }
   0x2   :  { %v59_v1 = vld [vmem:[%s1071_s1] sm:$0xff]  ;;  %63 = vrot.lane.b32.xlu0 %v58_v0, %s859_s27  ;;  %784 = vmatprep.subr.mxu0 %v862_v5 }
   0x3   :  { %v817_v4 = vpack.c.bf16 %v60_v2, %v59_v1  ;;  %v61_v6 = vld [vmem:[%s1072_s2] sm:$0xf] }
   0x4   :  { %17 = vsyncpa [#allocation3], 0  ;;  %vm146_vm2 = vcmask 130048   ;;  %785 = vmatpush3.msk.msra.mxu0 %vm68_vm1, %v61_v6  ;;  %v954_v7 = vld [vmem:[%s1073_s3] sm:$0xf]  ;;  %786 = vmatprep.mubr.msk.f32.mxu0 %vm861_vm0, %v862_v5  ;;  %s863_s30 = smov 120   ;;  %v42_v15 = vlaneseq }
   0x5   :  { %818 = vmatpush3.bf16.msra.mxu1 %v817_v4  ;;  %566 = vrot.lane.b32.xlu1 %v58_v0, %s863_s30  ;;  %vm65_vm3 = vcmask 31744   ;;  %s864_s2 = smov 124   ;;  %v270_v10 = vld [vmem:[%s1075_s5] sm:$0xff]  ;;  %s865_s14 = smov 8   ;;  %vm229_vm5 = vcmask 64512   ;;  %vm657_vm6 = vcmask 130112  }
   0x6   :  { %801 = vmatprep.subr.mxu1 %v862_v5  ;;  %796 = vmatprep.subr.mxu0 %v862_v5  ;;  %v979_v16 = vshrl.u32 %v42_v15, 7  ;;  %v761_v23 = vld [vmem:[%s1074_s4] ss:$0 sm:$0xff]  ;;  %s867_s20 = smov 112  }
   0x7   :  { %487 = vrot.lane.b32.xlu0 %v58_v0, %s864_s2  ;;  %v998_v47 = vld [vmem:[%s1077_s7] sm:$0x1] }
   0x8   :  { %794 = vmatmul.mubr.msk.f32.vlgmr.msra.gmra.mrb[0].mxu1 %vm146_vm2, %v58_v0  ;;  %v48_v17 = vand.u32 3, %v979_v16  ;;  %v1001_v48 = vsub.s32 0, %v979_v16  ;;  %v1007_v51 = vld [vmem:[%s1078_s8] sm:$0x1] }
   0x9   :  { %802 = vmatpush3.msk.msra.mxu1 %vm68_vm1, %v954_v7  ;;  %803 = vmatprep.mubr.msk.f32.mxu1 %vm861_vm0, %v862_v5  ;;  %v770_v2 = vld [vmem:[%s1079_s9] ss:$0 sm:$0xff] }
   0xa   :  { %811 = vmatprep.subr.mxu1 %v862_v5  ;;  %vm984_vm4 = vcmp.eq.s32.totalorder %v48_v17, 0  ;;  %vm57_vm7 = vcmp.eq.s32.totalorder %v48_v17, 3 }
   0xc   :  { %804 = vmatmul.mubr.msk.f32.vlgmr.msra.gmra.mrb[2].mxu1 %vm65_vm3, %v58_v0 }
   0xd   :  { %812 = vmatpush3.msk.msra.mxu1 %vm68_vm1, %v954_v7  ;;  %813 = vmatprep.mubr.msk.f32.mxu1 %vm861_vm0, %v862_v5 }
  0x74   :  { %v64_v8 = vpop.permute.xlu0 %63 }
  0x75   :  { %787 = vmatmul.mubr.msk.f32.vlgmr.msra.gmra.mrb[0].mxu0 %vm65_vm3, %v64_v8 }
  0x76   :  { %798 = vmatprep.mubr.msk.f32.mxu0 %vm861_vm0, %v862_v5  ;;  %797 = vmatpush3.msra.mxu0 %v270_v10 }
  0x77   :  { %v567_v9 = vpop.permute.xlu1 %566  ;;  %806 = vmatprep.subr.mxu0 %v862_v5 }
  0x78   :  { %814 = vmatmul.mubr.msk.f32.vlgmr.msra.gmra.mrb[4].mxu1 %vm65_vm3, %v567_v9 }
  0x79   :  { %v488_v59 = vpop.permute.xlu0 %487 }
  0xdb   :  { %v215_v11 = vpop.f32.mrb[0].mxu1 }
  0xdc   :  { %v795_v12 = vpop.f32.mrb[1].mxu1 }
  0xdf   :  { %v478_v13 = vpop.f32.mrb[2].mxu1 }
  0xe0   :  { %483 = vrot.lane.b32.xlu1 %v478_v13, %s865_s14  ;;  %v805_v14 = vpop.f32.mrb[3].mxu1 }
 0x148   :  { %v138_v19 = vpop.f32.mrb[0].mxu0 }
 0x149   :  { %v142_v20 = vrot.slane %v138_v19, 7  ;;  %v788_v21 = vpop.f32.mrb[1].mxu0 }
 0x14b   :  { %v145_v22 = vsel %vm984_vm4, 0.0, %v142_v20  ;;  %v636_v60 = vpop.f32.mrb[4].mxu1 }
 0x14c   :  { %v216_v24 = vadd.f32 %v215_v11, %v145_v22  ;;  %v815_v61 = vpop.f32.mrb[5].mxu1  ;;  %641 = vrot.lane.b32.xlu1 %v636_v60, %s865_s14 }
 0x14e   :  { %v226_v25 = vadd.f32 %v761_v23, %v216_v24 }
 0x150   :  { %v237_v26 = vmul.f32 %v226_v25, %v226_v25  ;;  %v230_v27 = vsel %vm229_vm5, %v226_v25, 0.0 }
 0x151   :  { %v231_v28 = vrot.slane %v230_v27, 4 }
 0x152   :  { %v238_v29 = vsel %vm229_vm5, %v237_v26, 0.0  ;;  %v484_v3 = vpop.permute.xlu1 %483 }
 0x153   :  { %v232_v30 = vadd.f32 %v231_v28, %v230_v27  ;;  %v239_v31 = vrot.slane %v238_v29, 4  ;;  %v486_v4 = vmax.f32 %v138_v19, %v484_v3 }
 0x155   :  { %v233_v32 = vrot.slane %v232_v30, 2  ;;  %v240_v33 = vadd.f32 %v239_v31, %v238_v29 }
 0x157   :  { %v234_v34 = vadd.f32 %v233_v32, %v232_v30  ;;  %v241_v35 = vrot.slane %v240_v33, 2 }
 0x159   :  { %v235_v36 = vrot.slane %v234_v34, 1  ;;  %v242_v37 = vadd.f32 %v241_v35, %v240_v33  ;;  %v866_v35 = vmov 1966171168  }
 0x15b   :  { %v236_v38 = vadd.f32 %v235_v36, %v234_v34  ;;  %v243_v39 = vrot.slane %v242_v37, 1  ;;  %v682_v36 = vunpack.c.l.s4 %v866_v35 }
 0x15d   :  { %v244_v40 = vadd.f32 %v243_v39, %v242_v37  ;;  %v245_v41 = vmul.f32 0.125, %v236_v38  ;;  %v683_v37 = vunpack.c.0.s8 %v682_v36 }
 0x15f   :  { %v246_v42 = vmul.f32 0.125, %v244_v40  ;;  %v247_v43 = vmul.f32 %v245_v41, %v245_v41  ;;  %v686_v38 = vsub.s32 %v683_v37, %v979_v16 }
 0x161   :  { %v248_v44 = vsub.f32 %v246_v42, %v247_v43  ;;  %v655_v42 = vld [vmem:[%s1080_s10] sm:$0x1] }
 0x163   :  { %v249_v45 = vmax.f32 %v248_v44, 0.0 }
 0x165   :  { %v250_v46 = vadd.f32 1e-05, %v249_v45 }
 0x167   :  { %829 = vrsqrt.f32 %v250_v46 }
 0x171   :  { %v830_v49 = vpop.eup %829 }
 0x172   :  { %v252_v50 = vmul.f32 %v830_v49, %v998_v47 }
 0x174   :  { %v253_v52 = vmul.f32 %v252_v50, %v245_v41  ;;  %v259_v53 = vrot.slane %v252_v50, %v1001_v48 }
 0x176   :  { %v254_v54 = vsub.f32 %v1007_v51, %v253_v52  ;;  %v261_v55 = vmul.f32 %v259_v53, %v226_v25  ;;  %v656_v53 = vld [vmem:[%s1081_s11] sm:$0x1] }
 0x178   :  { %v266_v56 = vrot.slane %v254_v54, %v1001_v48 }
 0x17a   :  { %v268_v57 = vadd.f32 %v266_v56, %v261_v55 }
 0x17c   :  { %v269_v58 = vmax.f32 %v268_v57, 0.0 }
 0x17e   :  { %799 = vmatmul.mubr.msk.f32.vlgmr.msra.gmra.mrb[2].mxu0 %vm229_vm5, %v269_v58 }
 0x17f   :  { %807 = vmatpush3.msk.msra.mxu0 %vm68_vm1, %v954_v7  ;;  %808 = vmatprep.mubr.msk.f32.mxu0 %vm861_vm0, %v862_v5 }
 0x182   :  { %809 = vmatmul.mubr.msk.f32.vlgmr.msra.gmra.mrb[4].mxu0 %vm65_vm3, %v488_v59 }
 0x1be   :  { %v642_v6 = vpop.permute.xlu1 %641 }
 0x251   :  { %v1019_v62 = vpop.f32.mrb[2].mxu0 }
 0x252   :  { %v800_v63 = vpop.f32.mrb[3].mxu0  ;;  %v344_v60 = vrot.slane %v1019_v62, 7 }
 0x255   :  { %v557_v0 = vpop.f32.mrb[4].mxu0 }
 0x256   :  { %562 = vrot.lane.b32.xlu0 %v557_v0, %s865_s14  ;;  %v810_v1 = vpop.f32.mrb[5].mxu0 }
 0x257   :  { %v345_v1 = vsel %vm984_vm4, 0.0, %v344_v60 }
 0x25a   :  { %651 = vrot.lane.b32.xlu0 %v770_v2, %s865_s14 }
 0x2c8   :  { %v563_v5 = vpop.permute.xlu0 %562 }
 0x2c9   :  { %v565_v7 = vmax.f32 %v486_v4, %v563_v5  ;;  %v763_v5 = vld [vmem:[%s1076_s6] ss:$0 sm:$0xff]  ;;  %s868_s6 = smov [#allocation2]  }
 0x2ca   :  { %s750_s23 = sshll.u32 %s868_s6, 4  ;;  %s751_s23 = int_to_ptr.vmem [resolvable:$true] %s750_s23 }
 0x2cb   :  { %v644_v8 = vmax.f32 %v565_v7, %v642_v6  ;;  %s835_s24 = scalar_lea.vmem %s751_s23, 128  ;;  %p840_p1 = scmp.lt.s32.totalorder %s751_s23, %s751_s23 }
 0x2cc   :  { %v652_v9 = vpop.permute.xlu0 %651  ;;  %p836_p0 = scmp.ne.s32.totalorder %s751_s23, %s835_s24  ;;  %p841_p2 = scmp.lt.s32.totalorder %s835_s24, %s835_s24 }
 0x2cd   :  { %v654_v10 = vadd.f32 %v652_v9, %v644_v8 }
 0x2ce   :  { %p842_p3 = por %p841_p2, %p840_p1 }
 0x2cf   :  { %v658_v11 = vsel %vm657_vm6, %v654_v10, 0.0  ;;  %v665_v12 = vmul.f32 %v654_v10, %v654_v10 }
 0x2d0   :  { %v659_v13 = vrot.slane %v658_v11, 4  ;;  %p843_p4 = pnand %p842_p3, %p836_p0 }
 0x2d1   :  { %v666_v14 = vsel %vm657_vm6, %v665_v12, 0.0 }
 0x2d2   :  { %v660_v15 = vadd.f32 %v659_v13, %v658_v11  ;;  %v667_v20 = vrot.slane %v666_v14, 4 }
 0x2d4   :  { %v661_v21 = vrot.slane %v660_v15, 2  ;;  %v668_v22 = vadd.f32 %v667_v20, %v666_v14 }
 0x2d6   :  { %v662_v23 = vadd.f32 %v661_v21, %v660_v15  ;;  %v669_v24 = vrot.slane %v668_v22, 2 }
 0x2d8   :  { %v663_v25 = vrot.slane %v662_v23, 1  ;;  %v670_v26 = vadd.f32 %v669_v24, %v668_v22 }
 0x2da   :  { %v664_v19 = vadd.f32 %v663_v25, %v662_v23  ;;  %v671_v27 = vrot.slane %v670_v26, 1 }
 0x2dc   :  { %v672_v28 = vadd.f32 %v671_v27, %v670_v26  ;;  %v673_v29 = vmul.f32 0.125, %v664_v19 }
 0x2de   :  { %v674_v30 = vmul.f32 0.125, %v672_v28  ;;  %v675_v31 = vmul.f32 %v673_v29, %v673_v29 }
 0x2e0   :  { %v676_v32 = vsub.f32 %v674_v30, %v675_v31 }
 0x2e2   :  { %v677_v33 = vmax.f32 %v676_v32, 0.0 }
 0x2e4   :  { %v678_v34 = vadd.f32 1e-05, %v677_v33 }
 0x2e6   :  { %831 = vrsqrt.f32 %v678_v34 }
 0x2f0   :  { %v832_v39 = vpop.eup %831 }
 0x2f1   :  { %v687_v40 = vrot.slane %v832_v39, %v686_v38 }
 0x2f3   :  { %v694_v41 = vrot.slane %v687_v40, %v686_v38 }
 0x2f5   :  { %695 = vrot.lane.b32.xlu1 %v694_v41, %s863_s30 }
 0x367   :  { %v696_v43 = vpop.permute.xlu1 %695 }
 0x368   :  { %v698_v44 = vmul.f32 %v696_v43, %v655_v42 }
 0x36a   :  { %v703_v45 = vrot.slane %v698_v44, %v1001_v48 }
 0x36c   :  { %704 = vrot.lane.b32.xlu0 %v703_v45, %s865_s14 }
 0x3de   :  { %v705_v46 = vpop.permute.xlu0 %704 }
 0x3df   :  { %v707_v49 = vmul.f32 %v705_v46, %v673_v29  ;;  %v727_v57 = vmul.f32 %v705_v46, %v654_v10 }
 0x3e1   :  { %v715_v50 = vrot.slane %v707_v49, %v686_v38 }
 0x3e3   :  { %v722_v52 = vrot.slane %v715_v50, %v686_v38 }
 0x3e5   :  { %723 = vrot.lane.b32.xlu1 %v722_v52, %s863_s30 }
 0x3e9   :  { %351 = vrot.lane.b32.xlu1 %v1019_v62, %s867_s20 }
 0x457   :  { %v724_v54 = vpop.permute.xlu1 %723 }
 0x458   :  { %v726_v55 = vsub.f32 %v656_v53, %v724_v54 }
 0x45a   :  { %v732_v56 = vrot.slane %v726_v55, %v1001_v48 }
 0x45b   :  { %v352_v61 = vpop.permute.xlu1 %351 }
 0x45c   :  { %733 = vrot.lane.b32.xlu0 %v732_v56, %s865_s14  ;;  %v354_v0 = vrot.slane %v352_v61, 1 }
 0x45e   :  { %v357_v3 = vsel %vm57_vm7, 0.0, %v354_v0 }
 0x460   :  { %347 = vrot.lane.b32.xlu0 %v1019_v62, %s863_s30 }
 0x4ce   :  { %v734_v58 = vpop.permute.xlu0 %733 }
 0x4cf   :  { %v736_v59 = vadd.f32 %v734_v58, %v727_v57 }
 0x4d1   :  { %738 = vrot.lane.b32.xlu1 %v736_v59, %s863_s30 }
 0x4d2   :  { %v348_v63 = vpop.permute.xlu0 %347 }
 0x4d3   :  { %v350_v2 = vadd.f32 %v348_v63, %v345_v1 }
 0x4d5   :  { %v358_v4 = vadd.f32 %v357_v3, %v350_v2 }
 0x4d7   :  { %v366_v6 = vadd.f32 %v763_v5, %v358_v4 }
 0x4d9   :  { %v367_v7 = vsel %vm229_vm5, %v366_v6, 0.0  ;;  %v374_v62 = vmul.f32 %v366_v6, %v366_v6 }
 0x4da   :  { %v368_v8 = vrot.slane %v367_v7, 4 }
 0x4db   :  { %v375_v9 = vsel %vm229_vm5, %v374_v62, 0.0 }
 0x4dc   :  { %v369_v10 = vadd.f32 %v368_v8, %v367_v7  ;;  %v376_v18 = vrot.slane %v375_v9, 4 }
 0x4de   :  { %v370_v11 = vrot.slane %v369_v10, 2  ;;  %v377_v12 = vadd.f32 %v376_v18, %v375_v9 }
 0x4e0   :  { %v371_v16 = vadd.f32 %v370_v11, %v369_v10  ;;  %v378_v17 = vrot.slane %v377_v12, 2 }
 0x4e2   :  { %v379_v13 = vadd.f32 %v378_v17, %v377_v12  ;;  %v372_v14 = vrot.slane %v371_v16, 1 }
 0x4e4   :  { %v380_v15 = vrot.slane %v379_v13, 1  ;;  %v373_v20 = vadd.f32 %v372_v14, %v371_v16 }
 0x4e6   :  { %v381_v21 = vadd.f32 %v380_v15, %v379_v13  ;;  %v382_v22 = vmul.f32 0.125, %v373_v20 }
 0x4e8   :  { %v383_v23 = vmul.f32 0.125, %v381_v21  ;;  %v384_v24 = vmul.f32 %v382_v22, %v382_v22 }
 0x4ea   :  { %v385_v25 = vsub.f32 %v383_v23, %v384_v24 }
 0x4ec   :  { %v386_v26 = vmax.f32 %v385_v25, 0.0 }
 0x4ee   :  { %v387_v19 = vadd.f32 1e-05, %v386_v26 }
 0x4f0   :  { %833 = vrsqrt.f32 %v387_v19 }
 0x4fa   :  { %v834_v27 = vpop.eup %833 }
 0x4fb   :  { %v389_v28 = vmul.f32 %v834_v27, %v998_v47 }
 0x4fd   :  { %v390_v29 = vmul.f32 %v389_v28, %v382_v22  ;;  %v396_v31 = vrot.slane %v389_v28, %v1001_v48 }
 0x4ff   :  { %v391_v30 = vsub.f32 %v1007_v51, %v390_v29  ;;  %v398_v33 = vmul.f32 %v396_v31, %v366_v6 }
 0x501   :  { %v403_v32 = vrot.slane %v391_v30, %v1001_v48 }
 0x503   :  { %v405_v34 = vadd.f32 %v403_v32, %v398_v33 }
 0x543   :  { %v739_v35 = vpop.permute.xlu1 %738 }
 0x544   :  { %v741_v36 = vadd.f32 %v739_v35, %v405_v34 }
 0x546   :  { %v742_v37 = vmax.f32 %v741_v36, 0.0 }
 0x548   :  { %743 = vst.msk [vmem:[#allocation2] sm:$0xff] %vm229_vm5, %v742_v37 }
 0x549   :  { %846 = shalt.err (!%p843_p4)
}
 0x54a   :  { %s847_s27 = scalar_lea.hbm %s1082_s12, 128 }
 0x54b   :  { %p848_p5 = scmp.ne.s32.totalorder %s1082_s12, %s847_s27  ;;  %p851_p6 = scmp.lt.u32.totalorder %s847_s27, %s1082_s12 }
 0x54d   :  { %p853_p7 = pnand %p851_p6, %p848_p5 }
 0x54f   :  { %856 = shalt.err (!%p853_p7)
}
 0x550   :  { %753 = dma.vmem_to_hbm [thread:$0]  %s751_s23, 128, %s1082_s12, [#allocation3]  }
 0x551   :  { %857 = dma.done.wait [#allocation3], 128  }
 0x552   :  { %858 = vsyncadd [#allocation3], 4294967168 }
 0x553   :  { %757 = vsyncpa [#allocation3], 1 }

</bundles_post_ra>
